<compile_context>
chip_gen: v7x
topology: tpu7x:2x2x1
jax: 0.10.0
libtpu: 0.0.40
codegen_flags: <defaults>
</compile_context>

<pallas_src>
import functools

import jax
import jax.numpy as jnp
from jax.experimental import pallas as pl
from jax.experimental.pallas import tpu as pltpu

_NEG_BIG = -1e30  # finite "minus infinity" — avoids inf-inf corner cases on TPU


def _round_up(x, m):
    return ((x + m - 1) // m) * m


def _make_kernel(seq_len, tile_s):
    """seq_len = real (unpadded) number of rows; tile_s = rows per grid step."""

    def kernel(q_ref, w1t_ref, bias_ref, w2t_ref, vrow_ref, vals_ref, out_ref,
               qproj_ref, m_ref, l_ref, acc_ref):
        pid = pl.program_id(0)
        n_tiles = pl.num_programs(0)

        # ---- init / hoisted per-sequence work (runs once) -------------------
        @pl.when(pid == 0)
        def _init():
            # W_1(query) + (b1 + b2): same for every row of every tile.
            qproj_ref[...] = (
                jnp.dot(q_ref[...], w1t_ref[...],
                        preferred_element_type=jnp.float32)
                + bias_ref[...])
            m_ref[...] = jnp.full_like(m_ref, _NEG_BIG)
            l_ref[...] = jnp.zeros_like(l_ref)
            acc_ref[...] = jnp.zeros_like(acc_ref)

        # ---- per-tile compute ----------------------------------------------
        vals = vals_ref[...]                                             # [T, E]
        v_proj = jnp.dot(vals, w2t_ref[...],
                         preferred_element_type=jnp.float32)             # [T, D]
        h = jnp.tanh(qproj_ref[...] + v_proj)                            # [T, D]

        # scores via VPU mul + lane reduce (avoids an N=1 MXU matmul and the
        # padded [D, 1] layout for v).
        scores = jnp.sum(h * vrow_ref[...], axis=-1, keepdims=True)      # [T, 1]

        # Mask rows past the real sequence length (padding from tiling).
        row = pid * tile_s + jax.lax.broadcasted_iota(jnp.int32, (tile_s, 1), 0)
        valid = row < seq_len
        scores = jnp.where(valid, scores, _NEG_BIG)

        # ---- online softmax update ------------------------------------------
        m_prev = m_ref[...]                                              # [1, 1]
        m_new = jnp.maximum(m_prev, jnp.max(scores, axis=0, keepdims=True))
        alpha = jnp.exp(m_prev - m_new)                                  # [1, 1]
        p = jnp.where(valid, jnp.exp(scores - m_new), 0.0)               # [T, 1]
        l_ref[...] = alpha * l_ref[...] + jnp.sum(p, axis=0, keepdims=True)
        acc_ref[...] = alpha * acc_ref[...] + jnp.sum(p * vals, axis=0,
                                                      keepdims=True)     # [1, E]
        m_ref[...] = m_new

        # ---- finalize --------------------------------------------------------
        @pl.when(pid == n_tiles - 1)
        def _finalize():
            out_ref[...] = (acc_ref[...] / l_ref[...]).astype(out_ref.dtype)

    return kernel


def additive_attention(query, values, W1_w, W1_b, W2_w, W2_b, v, *, tile_s=None):
    """query: [D], values: [S, E]. Weights in PyTorch Linear convention
    (W1_w: [D, D], W1_b: [D], W2_w: [D, E], W2_b: [D], v: [D]). Returns [E]."""
    S, E = values.shape
    D = query.shape[0]

    # Tile the sequence axis: multiple of 8 sublanes, capped so the values tile
    # (x2 double-buffer) plus the [T, D] intermediate stays far under scoped
    # VMEM even on v7x (32 MiB default).  512 rows x E f32 ~= a few hundred KB.
    if tile_s is None:
        tile_s = min(512, _round_up(S, 8))
    tile_s = max(8, _round_up(int(tile_s), 8))
    n_tiles = pl.cdiv(S, tile_s)
    padded_S = n_tiles * tile_s
    values_p = values if padded_S == S else jnp.pad(values,
                                                    ((0, padded_S - S), (0, 0)))

    q2 = query.reshape(1, D)
    w1_t = W1_w.T                               # [D, D]  right-multiply form
    w2_t = W2_w.T                               # [E, D]
    bias = (W1_b + W2_b).reshape(1, D)          # fused bias, built once here
    v_row = v.reshape(1, D)                     # lane-dense, no [D, 1] padding

    resident = lambda shape: pl.BlockSpec(shape, lambda i: (0,) * len(shape))

    cost = pl.CostEstimate(
        flops=int(2 * S * E * D + 2 * D * D + 2 * S * D + 2 * S * E),
        transcendentals=int(S * D + S),
        bytes_accessed=int(4 * (S * E + D * D + E * D + 3 * D + E)),
    )

    out = pl.pallas_call(
        _make_kernel(S, tile_s),
        out_shape=jax.ShapeDtypeStruct((1, E), values.dtype),
        grid=(n_tiles,),
        in_specs=[
            resident((1, D)),                                   # query
            resident((D, D)),                                   # W1^T
            resident((1, D)),                                   # fused bias
            resident((E, D)),                                   # W2^T
            resident((1, D)),                                   # v (row)
            pl.BlockSpec((tile_s, E), lambda i: (i, 0)),        # values (streamed)
        ],
        out_specs=resident((1, E)),
        scratch_shapes=[
            pltpu.VMEM((1, D), jnp.float32),   # q_proj (hoisted GEMV)
            pltpu.VMEM((1, 1), jnp.float32),   # running max m
            pltpu.VMEM((1, 1), jnp.float32),   # running denom l
            pltpu.VMEM((1, E), jnp.float32),   # output accumulator
        ],
        compiler_params=pltpu.CompilerParams(
            dimension_semantics=("arbitrary",)),
        cost_estimate=cost,
    )(q2, w1_t, bias, w2_t, v_row, values_p)
    return out.reshape(E)


def additive_attention_ref(query, values, W1_w, W1_b, W2_w, W2_b, v):
    """Pure-JAX reference mirroring the PyTorch module exactly."""
    S = values.shape[0]
    q_rep = jnp.tile(query[None, :], (S, 1))                      # [S, D]
    weights = q_rep @ W1_w.T + W1_b + values @ W2_w.T + W2_b      # [S, D]
    scores = jnp.tanh(weights) @ v                                # [S]
    w = jax.nn.softmax(scores, axis=0)
    return w @ values                                             # [E]


if __name__ == "__main__":
    # Small shapes consistent with the module (defaults are 300/300; use 128
    # here so the feature axis is lane-aligned).
    encoder_dim = 128
    decoder_dim = 128

    key = jax.random.PRNGKey(0)
    k_q, k_v, k_w1, k_b1, k_w2, k_b2, k_vec = jax.random.split(key, 7)

    # Deterministic synthetic parameters (shapes match the PyTorch __init__).
    v_param = jax.random.uniform(k_vec, (decoder_dim,), jnp.float32)  # torch.rand(D)
    W1_w = jax.random.uniform(k_w1, (decoder_dim, decoder_dim), jnp.float32,
                              -0.05, 0.05)
    W1_b = jax.random.uniform(k_b1, (decoder_dim,), jnp.float32, -0.05, 0.05)
    W2_w = jax.random.uniform(k_w2, (decoder_dim, encoder_dim), jnp.float32,
                              -0.05, 0.05)
    W2_b = jax.random.uniform(k_b2, (decoder_dim,), jnp.float32, -0.05, 0.05)

    query = jax.random.normal(k_q, (decoder_dim,), jnp.float32)

    # Case 1: tiny sequence (single tile, no padding).
    values_a = jax.random.normal(k_v, (8, encoder_dim), jnp.float32)
    res_a = jax.block_until_ready(
        additive_attention(query, values_a, W1_w, W1_b, W2_w, W2_b, v_param))
    ref_a = additive_attention_ref(query, values_a, W1_w, W1_b, W2_w, W2_b, v_param)
    assert res_a.shape == (encoder_dim,)
    assert jnp.allclose(res_a, ref_a, atol=1e-5, rtol=1e-5), "mismatch (case 1)"

    # Case 2: multi-tile streaming path with a partially padded last tile
    # (S=40, tile_s=16 -> 3 grid steps, 8 masked rows) to exercise the
    # online-softmax accumulation and padding mask.
    values_b = jax.random.normal(jax.random.fold_in(k_v, 1),
                                 (40, encoder_dim), jnp.float32)
    res_b = jax.block_until_ready(
        additive_attention(query, values_b, W1_w, W1_b, W2_w, W2_b, v_param,
                           tile_s=16))
    ref_b = additive_attention_ref(query, values_b, W1_w, W1_b, W2_w, W2_b, v_param)
    assert res_b.shape == (encoder_dim,)
    assert jnp.allclose(res_b, ref_b, atol=1e-5, rtol=1e-5), "mismatch (case 2)"

    print("KERNEL_OK")
</pallas_src>

<mosaic_0001>
module attributes {stable_mosaic.version = 11 : i64} {
  func.func @kernel(%arg0: i32, %arg1: memref<1x128xf32, #tpu.memory_space<vmem>>, %arg2: memref<128x128xf32, #tpu.memory_space<vmem>>, %arg3: memref<1x128xf32, #tpu.memory_space<vmem>>, %arg4: memref<128x128xf32, #tpu.memory_space<vmem>>, %arg5: memref<1x128xf32, #tpu.memory_space<vmem>>, %arg6: memref<8x128xf32, #tpu.memory_space<vmem>>, %arg7: memref<1x128xf32, #tpu.memory_space<vmem>>, %arg8: memref<1x128xf32, #tpu.memory_space<vmem>>, %arg9: memref<1x1xf32, #tpu.memory_space<vmem>>, %arg10: memref<1x1xf32, #tpu.memory_space<vmem>>, %arg11: memref<1x128xf32, #tpu.memory_space<vmem>>) attributes {dimension_semantics = [#tpu.dimension_semantics<arbitrary>], iteration_bounds = array<i64: 1>, scalar_prefetch = 0 : i64, scratch_operands = 4 : i64, tpu.core_type = #tpu.core_type<tc>, window_params = [{pipeline_mode = #tpu.pipeline_mode<synchronous>, transform_indices = @transform_0, window_bounds = array<i64: 1, 128>}, {pipeline_mode = #tpu.pipeline_mode<synchronous>, transform_indices = @transform_1, window_bounds = array<i64: 128, 128>}, {pipeline_mode = #tpu.pipeline_mode<synchronous>, transform_indices = @transform_2, window_bounds = array<i64: 1, 128>}, {pipeline_mode = #tpu.pipeline_mode<synchronous>, transform_indices = @transform_3, window_bounds = array<i64: 128, 128>}, {pipeline_mode = #tpu.pipeline_mode<synchronous>, transform_indices = @transform_4, window_bounds = array<i64: 1, 128>}, {transform_indices = @transform_5, window_bounds = array<i64: 8, 128>}, {pipeline_mode = #tpu.pipeline_mode<synchronous>, transform_indices = @transform_6, window_bounds = array<i64: 1, 128>}]} {
    %c0_i32 = arith.constant 0 : i32
    %0 = arith.cmpi eq, %arg0, %c0_i32 : i32
    %1 = arith.extui %0 : i1 to i32
    %c0_i32_0 = arith.constant 0 : i32
    %2 = arith.cmpi ne, %1, %c0_i32_0 : i32
    scf.if %2 {
      %c0_29 = arith.constant 0 : index
      %c0_30 = arith.constant 0 : index
      %53 = vector.load %arg1[%c0_29, %c0_30] : memref<1x128xf32, #tpu.memory_space<vmem>>, vector<1x128xf32>
      %c0_31 = arith.constant 0 : index
      %c0_32 = arith.constant 0 : index
      %54 = vector.load %arg2[%c0_31, %c0_32] : memref<128x128xf32, #tpu.memory_space<vmem>>, vector<128x128xf32>
      %cst_33 = arith.constant dense<0.000000e+00> : vector<1x128xf32>
      %55 = tpu.matmul %53, %54, %cst_33 {dimension_numbers = #tpu.dot_dimension_numbers<[1], [0], [0], [1], [0, 0, 1, 1], [], []>} : vector<1x128xf32>, vector<128x128xf32>, vector<1x128xf32> -> vector<1x128xf32>
      %c0_34 = arith.constant 0 : index
      %c0_35 = arith.constant 0 : index
      %56 = vector.load %arg3[%c0_34, %c0_35] : memref<1x128xf32, #tpu.memory_space<vmem>>, vector<1x128xf32>
      %57 = arith.addf %55, %56 : vector<1x128xf32>
      %c0_36 = arith.constant 0 : index
      %c0_37 = arith.constant 0 : index
      %58 = vector.load %arg8[%c0_36, %c0_37] : memref<1x128xf32, #tpu.memory_space<vmem>>, vector<1x128xf32>
      tpu.vector_store %arg8[%c0_36, %c0_37], %57 {strides = array<i32>} : memref<1x128xf32, #tpu.memory_space<vmem>>, vector<1x128xf32>,
      %cst_38 = arith.constant -1.000000e+30 : f32
      %59 = vector.broadcast %cst_38 : f32 to vector<1x1xf32>
      %c0_39 = arith.constant 0 : index
      %c0_40 = arith.constant 0 : index
      %60 = vector.load %arg9[%c0_39, %c0_40] : memref<1x1xf32, #tpu.memory_space<vmem>>, vector<1x1xf32>
      tpu.vector_store %arg9[%c0_39, %c0_40], %59 {strides = array<i32>} : memref<1x1xf32, #tpu.memory_space<vmem>>, vector<1x1xf32>,
      %cst_41 = arith.constant 0.000000e+00 : f32
      %61 = vector.broadcast %cst_41 : f32 to vector<1x1xf32>
      %c0_42 = arith.constant 0 : index
      %c0_43 = arith.constant 0 : index
      %62 = vector.load %arg10[%c0_42, %c0_43] : memref<1x1xf32, #tpu.memory_space<vmem>>, vector<1x1xf32>
      tpu.vector_store %arg10[%c0_42, %c0_43], %61 {strides = array<i32>} : memref<1x1xf32, #tpu.memory_space<vmem>>, vector<1x1xf32>,
      %cst_44 = arith.constant 0.000000e+00 : f32
      %63 = vector.broadcast %cst_44 : f32 to vector<1x128xf32>
      %c0_45 = arith.constant 0 : index
      %c0_46 = arith.constant 0 : index
      %64 = vector.load %arg11[%c0_45, %c0_46] : memref<1x128xf32, #tpu.memory_space<vmem>>, vector<1x128xf32>
      tpu.vector_store %arg11[%c0_45, %c0_46], %63 {strides = array<i32>} : memref<1x128xf32, #tpu.memory_space<vmem>>, vector<1x128xf32>,
    } else {
    }
    %c0 = arith.constant 0 : index
    %c0_1 = arith.constant 0 : index
    %3 = vector.load %arg6[%c0, %c0_1] : memref<8x128xf32, #tpu.memory_space<vmem>>, vector<8x128xf32>
    %c0_2 = arith.constant 0 : index
    %c0_3 = arith.constant 0 : index
    %4 = vector.load %arg4[%c0_2, %c0_3] : memref<128x128xf32, #tpu.memory_space<vmem>>, vector<128x128xf32>
    %cst = arith.constant dense<0.000000e+00> : vector<8x128xf32>
    %5 = tpu.matmul %3, %4, %cst {dimension_numbers = #tpu.dot_dimension_numbers<[1], [0], [0], [1], [0, 0, 1, 1], [], []>} : vector<8x128xf32>, vector<128x128xf32>, vector<8x128xf32> -> vector<8x128xf32>
    %c0_4 = arith.constant 0 : index
    %c0_5 = arith.constant 0 : index
    %6 = vector.load %arg8[%c0_4, %c0_5] : memref<1x128xf32, #tpu.memory_space<vmem>>, vector<1x128xf32>
    %7 = vector.broadcast %6 : vector<1x128xf32> to vector<8x128xf32>
    %8 = arith.addf %7, %5 : vector<8x128xf32>
    %9 = math.tanh %8 : vector<8x128xf32>
    %c0_6 = arith.constant 0 : index
    %c0_7 = arith.constant 0 : index
    %10 = vector.load %arg5[%c0_6, %c0_7] : memref<1x128xf32, #tpu.memory_space<vmem>>, vector<1x128xf32>
    %11 = vector.broadcast %10 : vector<1x128xf32> to vector<8x128xf32>
    %12 = arith.mulf %9, %11 : vector<8x128xf32>
    %cst_8 = arith.constant dense<0.000000e+00> : vector<8xf32>
    %13 = vector.multi_reduction <add>, %12, %cst_8 [1] : vector<8x128xf32> to vector<8xf32>
    %14 = vector.shape_cast %13 : vector<8xf32> to vector<8x1xf32>
    %c8_i32 = arith.constant 8 : i32
    %15 = arith.muli %arg0, %c8_i32 : i32
    %16 = tpu.iota {dimensions = array<i32: 0>} : vector<8x1xi32>
    %17 = vector.broadcast %15 : i32 to vector<8x1xi32>
    %18 = arith.addi %17, %16 : vector<8x1xi32>
    %c8_i32_9 = arith.constant 8 : i32
    %19 = vector.broadcast %c8_i32_9 : i32 to vector<8x1xi32>
    %20 = arith.cmpi slt, %18, %19 : vector<8x1xi32>
    %cst_10 = arith.constant -1.000000e+30 : f32
    %21 = vector.broadcast %cst_10 : f32 to vector<8x1xf32>
    %22 = arith.select %20, %14, %21 : vector<8x1xi1>, vector<8x1xf32>
    %c0_11 = arith.constant 0 : index
    %c0_12 = arith.constant 0 : index
    %23 = vector.load %arg9[%c0_11, %c0_12] : memref<1x1xf32, #tpu.memory_space<vmem>>, vector<1x1xf32>
    %cst_13 = arith.constant dense<0xFF800000> : vector<1xf32>
    %24 = vector.multi_reduction <maximumf>, %22, %cst_13 [0] : vector<8x1xf32> to vector<1xf32>
    %25 = vector.shape_cast %24 : vector<1xf32> to vector<1x1xf32>
    %26 = arith.maximumf %23, %25 : vector<1x1xf32>
    %27 = arith.subf %23, %26 : vector<1x1xf32>
    %28 = math.exp %27 : vector<1x1xf32>
    %29 = vector.broadcast %26 : vector<1x1xf32> to vector<8x1xf32>
    %30 = arith.subf %22, %29 : vector<8x1xf32>
    %31 = math.exp %30 : vector<8x1xf32>
    %cst_14 = arith.constant 0.000000e+00 : f32
    %32 = vector.broadcast %cst_14 : f32 to vector<8x1xf32>
    %33 = arith.select %20, %31, %32 : vector<8x1xi1>, vector<8x1xf32>
    %c0_15 = arith.constant 0 : index
    %c0_16 = arith.constant 0 : index
    %34 = vector.load %arg10[%c0_15, %c0_16] : memref<1x1xf32, #tpu.memory_space<vmem>>, vector<1x1xf32>
    %35 = arith.mulf %28, %34 : vector<1x1xf32>
    %cst_17 = arith.constant dense<0.000000e+00> : vector<1xf32>
    %36 = vector.multi_reduction <add>, %33, %cst_17 [0] : vector<8x1xf32> to vector<1xf32>
    %37 = vector.shape_cast %36 : vector<1xf32> to vector<1x1xf32>
    %38 = arith.addf %35, %37 : vector<1x1xf32>
    %c0_18 = arith.constant 0 : index
    %c0_19 = arith.constant 0 : index
    %39 = vector.load %arg10[%c0_18, %c0_19] : memref<1x1xf32, #tpu.memory_space<vmem>>, vector<1x1xf32>
    tpu.vector_store %arg10[%c0_18, %c0_19], %38 {strides = array<i32>} : memref<1x1xf32, #tpu.memory_space<vmem>>, vector<1x1xf32>,
    %c0_20 = arith.constant 0 : index
    %c0_21 = arith.constant 0 : index
    %40 = vector.load %arg11[%c0_20, %c0_21] : memref<1x128xf32, #tpu.memory_space<vmem>>, vector<1x128xf32>
    %41 = vector.broadcast %28 : vector<1x1xf32> to vector<1x128xf32>
    %42 = arith.mulf %41, %40 : vector<1x128xf32>
    %43 = vector.broadcast %33 : vector<8x1xf32> to vector<8x128xf32>
    %44 = arith.mulf %43, %3 : vector<8x128xf32>
    %cst_22 = arith.constant dense<0.000000e+00> : vector<128xf32>
    %45 = vector.multi_reduction <add>, %44, %cst_22 [0] : vector<8x128xf32> to vector<128xf32>
    %46 = vector.shape_cast %45 : vector<128xf32> to vector<1x128xf32>
    %47 = arith.addf %42, %46 : vector<1x128xf32>
    %c0_23 = arith.constant 0 : index
    %c0_24 = arith.constant 0 : index
    %48 = vector.load %arg11[%c0_23, %c0_24] : memref<1x128xf32, #tpu.memory_space<vmem>>, vector<1x128xf32>
    tpu.vector_store %arg11[%c0_23, %c0_24], %47 {strides = array<i32>} : memref<1x128xf32, #tpu.memory_space<vmem>>, vector<1x128xf32>,
    %c0_25 = arith.constant 0 : index
    %c0_26 = arith.constant 0 : index
    %49 = vector.load %arg9[%c0_25, %c0_26] : memref<1x1xf32, #tpu.memory_space<vmem>>, vector<1x1xf32>
    tpu.vector_store %arg9[%c0_25, %c0_26], %26 {strides = array<i32>} : memref<1x1xf32, #tpu.memory_space<vmem>>, vector<1x1xf32>,
    %c0_i32_27 = arith.constant 0 : i32
    %50 = arith.cmpi eq, %arg0, %c0_i32_27 : i32
    %51 = arith.extui %50 : i1 to i32
    %c0_i32_28 = arith.constant 0 : i32
    %52 = arith.cmpi ne, %51, %c0_i32_28 : i32
    scf.if %52 {
      %c0_29 = arith.constant 0 : index
      %c0_30 = arith.constant 0 : index
      %53 = vector.load %arg11[%c0_29, %c0_30] : memref<1x128xf32, #tpu.memory_space<vmem>>, vector<1x128xf32>
      %c0_31 = arith.constant 0 : index
      %c0_32 = arith.constant 0 : index
      %54 = vector.load %arg10[%c0_31, %c0_32] : memref<1x1xf32, #tpu.memory_space<vmem>>, vector<1x1xf32>
      %55 = vector.broadcast %54 : vector<1x1xf32> to vector<1x128xf32>
      %56 = arith.divf %53, %55 : vector<1x128xf32>
      %c0_33 = arith.constant 0 : index
      %c0_34 = arith.constant 0 : index
      %57 = vector.load %arg7[%c0_33, %c0_34] : memref<1x128xf32, #tpu.memory_space<vmem>>, vector<1x128xf32>
      tpu.vector_store %arg7[%c0_33, %c0_34], %56 {strides = array<i32>} : memref<1x128xf32, #tpu.memory_space<vmem>>, vector<1x128xf32>,
    } else {
    }
    return
  }
  func.func @transform_0(%arg0: i32) -> (i32, i32) {
    %c0_i32 = arith.constant 0 : i32
    %c0_i32_0 = arith.constant 0 : i32
    %c0_i32_1 = arith.constant 0 : i32
    return %c0_i32, %c0_i32_0 : i32, i32
  }
  func.func @transform_1(%arg0: i32) -> (i32, i32) {
    %c0_i32 = arith.constant 0 : i32
    %c0_i32_0 = arith.constant 0 : i32
    %c0_i32_1 = arith.constant 0 : i32
    return %c0_i32, %c0_i32_0 : i32, i32
  }
  func.func @transform_2(%arg0: i32) -> (i32, i32) {
    %c0_i32 = arith.constant 0 : i32
    %c0_i32_0 = arith.constant 0 : i32
    %c0_i32_1 = arith.constant 0 : i32
    return %c0_i32, %c0_i32_0 : i32, i32
  }
  func.func @transform_3(%arg0: i32) -> (i32, i32) {
    %c0_i32 = arith.constant 0 : i32
    %c0_i32_0 = arith.constant 0 : i32
    %c0_i32_1 = arith.constant 0 : i32
    return %c0_i32, %c0_i32_0 : i32, i32
  }
  func.func @transform_4(%arg0: i32) -> (i32, i32) {
    %c0_i32 = arith.constant 0 : i32
    %c0_i32_0 = arith.constant 0 : i32
    %c0_i32_1 = arith.constant 0 : i32
    return %c0_i32, %c0_i32_0 : i32, i32
  }
  func.func @transform_5(%arg0: i32) -> (i32, i32) {
    %c0_i32 = arith.constant 0 : i32
    %c0_i32_0 = arith.constant 0 : i32
    return %arg0, %c0_i32 : i32, i32
  }
  func.func @transform_6(%arg0: i32) -> (i32, i32) {
    %c0_i32 = arith.constant 0 : i32
    %c0_i32_0 = arith.constant 0 : i32
    %c0_i32_1 = arith.constant 0 : i32
    return %c0_i32, %c0_i32_0 : i32, i32
  }
}

</mosaic_0001>

<bundles_post_ra>
// kernel: tpu_custom_call.1
= control target key start
LH: loop header
LB: loop body
LE: loop exit
PB: predicated region body
PF: predicated region fallthrough
CT: control target
= control target key end

     0   :  { %11 = vsyncpa [#allocation7], 0  ;;  %s764_s0 = inlined_call_operand.hbm [shape: f32[1,128], index: 0, kind: input, shape index: {}]   ;;  %s765_s1 = inlined_call_operand.hbm [shape: f32[128,128], index: 1, kind: input, shape index: {}]   ;;  %s766_s2 = inlined_call_operand.vmem [shape: f32[1,128], index: 2, kind: input, shape index: {}]   ;;  %s767_s3 = inlined_call_operand.hbm [shape: f32[128,128], index: 3, kind: input, shape index: {}]   ;;  %s768_s4 = inlined_call_operand.vmem [shape: f32[1,128], index: 4, kind: input, shape index: {}]   ;;  %s769_s5 = inlined_call_operand.vmem [shape: f32[8,128], index: 5, kind: input, shape index: {}]   ;;  %s770_s6 = inlined_call_operand.hbm [shape: f32[1,128], index: 6, kind: output, shape index: {}]  }
   0x1   :  { %12 = vsyncpa [#allocation10], 0 }
   0x2   :  { %13 = vsyncpa [#allocation8], 0  ;;  %s635_s21 = smov [#allocation9]   ;;  %s541_s25 = scalar_lea.hbm %s765_s1, 2048 }
   0x3   :  { %s29_s22 = sshll.u32 %s635_s21, 4  ;;  %p542_p0 = scmp.ne.s32.totalorder %s765_s1, %s541_s25  ;;  %s30_s22 = int_to_ptr.vmem [resolvable:$true] %s29_s22 }
   0x4   :  { %p545_p1 = scmp.lt.u32.totalorder %s541_s25, %s765_s1 }
   0x6   :  { %p547_p2 = pnand %p545_p1, %p542_p0 }
   0x8   :  { %550 = shalt.err (!%p547_p2)
}
   0x9   :  { %s551_s30 = scalar_lea.vmem %s30_s22, 2048  ;;  %p556_p4 = scmp.lt.s32.totalorder %s30_s22, %s30_s22 }
   0xa   :  { %p552_p3 = scmp.ne.s32.totalorder %s30_s22, %s551_s30  ;;  %p557_p5 = scmp.lt.s32.totalorder %s551_s30, %s551_s30 }
   0xc   :  { %p558_p6 = por %p557_p5, %p556_p4 }
   0xe   :  { %p559_p7 = pnand %p558_p6, %p552_p3 }
  0x10   :  { %562 = shalt.err (!%p559_p7)
}
  0x11   :  { %s636_s7 = smov 128   ;;  %s637_s8 = smov 8  }
  0x12   :  { %35 = dma.hbm_to_vmem [thread:$0]  %s765_s1, 2048, %s30_s22, [#allocation10], %s636_s7, %s636_s7, %s637_s8  }
  0x13   :  { %s638_s11 = smov [#allocation6]   ;;  %s639_s13 = smov [#allocation11]  }
  0x14   :  { %s20_s12 = sshll.u32 %s638_s11, 4  ;;  %s43_s14 = sshll.u32 %s639_s13, 4  ;;  %s21_s12 = int_to_ptr.vmem [resolvable:$true] %s20_s12  ;;  %s44_s14 = int_to_ptr.vmem [resolvable:$true] %s43_s14 }
  0x15   :  { %s563_s17 = scalar_lea.hbm %s764_s0, 16 }
  0x16   :  { %p564_p8 = scmp.ne.s32.totalorder %s764_s0, %s563_s17  ;;  %p567_p9 = scmp.lt.u32.totalorder %s563_s17, %s764_s0 }
  0x18   :  { %p569_p10 = pnand %p567_p9, %p564_p8 }
  0x1a   :  { %572 = shalt.err (!%p569_p10)
}
  0x1b   :  { %s573_s1 = scalar_lea.vmem %s21_s12, 16  ;;  %s577_s22 = scalar_lea.vmem %s21_s12, 32 }
  0x1c   :  { %p574_p11 = scmp.ne.s32.totalorder %s21_s12, %s573_s1  ;;  %p578_p12 = scmp.lt.s32.totalorder %s21_s12, %s21_s12 }
  0x1d   :  { %p579_p13 = scmp.lt.s32.totalorder %s577_s22, %s573_s1 }
  0x1f   :  { %p580_p0 = por %p579_p13, %p578_p12 }
  0x21   :  { %p581_p1 = pnand %p580_p0, %p574_p11 }
  0x23   :  { %584 = shalt.err (!%p581_p1)
}
  0x24   :  { %23 = dma.hbm_to_vmem [thread:$0]  %s764_s0, 16, %s21_s12, [#allocation7]  }
  0x25   :  { %s585_s27 = scalar_lea.hbm %s767_s3, 2048 }
  0x26   :  { %p586_p2 = scmp.ne.s32.totalorder %s767_s3, %s585_s27  ;;  %p589_p3 = scmp.lt.u32.totalorder %s585_s27, %s767_s3 }
  0x28   :  { %p591_p4 = pnand %p589_p3, %p586_p2 }
  0x2a   :  { %594 = shalt.err (!%p591_p4)
}
  0x2b   :  { %s595_s10 = scalar_lea.vmem %s44_s14, 2048  ;;  %p600_p6 = scmp.lt.s32.totalorder %s44_s14, %s44_s14 }
  0x2c   :  { %p596_p5 = scmp.ne.s32.totalorder %s44_s14, %s595_s10  ;;  %p601_p7 = scmp.lt.s32.totalorder %s595_s10, %s595_s10 }
  0x2e   :  { %p602_p8 = por %p601_p7, %p600_p6 }
  0x30   :  { %p603_p9 = pnand %p602_p8, %p596_p5 }
  0x32   :  { %606 = shalt.err (!%p603_p9)
}
  0x33   :  { %49 = dma.hbm_to_vmem [thread:$0]  %s767_s3, 2048, %s44_s14, [#allocation10], %s636_s7, %s636_s7, %s637_s8  }
  0x34   :  { %629 = dma.done.wait [#allocation7], 16  }
  0x35   :  { %630 = vsyncadd [#allocation7], 4294967280 }
  0x36   :  { %631 = dma.done.wait [#allocation10], 4096  }
  0x37   :  { %632 = vsyncadd [#allocation10], 4294963200  ;;  %vm156_vm0 = vcmask 0   ;;  %v640_v0 = vmov 0.0|0.0   ;;  %v641_v1 = vmov 0.0   ;;  %vm642_vm1 = vmmov 0  }
  0x38   :  { %472 = vmatprep.subr.bf16.mxu0 %v640_v0  ;;  %496 = vmatprep.subr.bf16.mxu1 %v640_v0  ;;  %158 = vst.msk [vmem:[#allocation4] sm:$0x1] %vm156_vm0, %v641_v1  ;;  %159 = vst [vmem:[#allocation5] sm:$0x1] %v641_v1  ;;  %v643_v2 = vmov -1e+30  }
  0x39   :  { %434 = vmatprep.mubr.msk.f32.mxu0 %vm642_vm1, %v641_v1  ;;  %157 = vst.msk [vmem:[#allocation3] sm:$0x1] %vm156_vm0, %v643_v2  ;;  %469 = vmatprep.mubr.msk.f32.mxu1 %vm642_vm1, %v641_v1  ;;  %v68_v3 = vld [vmem:[#allocation9] sm:$0xff]  ;;  %v69_v4 = vld [vmem:[#allocation9 + $0x8] sm:$0xff]  ;;  %v70_v5 = vld [vmem:[#allocation9 + $0x10] sm:$0xff]  ;;  %vm296_vm2 = vcmask 7168  }
  0x3a   :  { %v473_v6 = vpack.c.bf16 %v69_v4, %v68_v3  ;;  %v71_v7 = vld [vmem:[#allocation9 + $0x18] sm:$0xff]  ;;  %v161_v8 = vld [vmem:[#allocation11] sm:$0xff]  ;;  %v162_v9 = vld [vmem:[#allocation11 + $0x8] sm:$0xff]  ;;  %v285_v3 = vlaneseq }
  0x3b   :  { %v476_v10 = vpack.c.bf16 %v71_v7, %v70_v5  ;;  %v497_v11 = vpack.c.bf16 %v162_v9, %v161_v8  ;;  %v163_v12 = vld [vmem:[#allocation11 + $0x10] sm:$0xff]  ;;  %v164_v13 = vld [vmem:[#allocation11 + $0x18] sm:$0xff]  ;;  %v72_v14 = vld [vmem:[#allocation9 + $0x20] sm:$0xff] }
  0x3c   :  { %474 = vmatpush3.bf16.msra.mxu0 %v473_v6  ;;  %v73_v15 = vld [vmem:[#allocation9 + $0x28] sm:$0xff]  ;;  %v500_v16 = vpack.c.bf16 %v164_v13, %v163_v12  ;;  %v165_v17 = vld [vmem:[#allocation11 + $0x20] sm:$0xff]  ;;  %v74_v20 = vld [vmem:[#allocation9 + $0x30] sm:$0xff]  ;;  %v286_v6 = vshrl.u32 %v285_v3, 7 }
  0x3d   :  { %475 = vmatprep.subr.bf16.mxu0 %v640_v0  ;;  %498 = vmatpush3.bf16.msra.mxu1 %v497_v11  ;;  %v166_v18 = vld [vmem:[#allocation11 + $0x28] sm:$0xff]  ;;  %v479_v19 = vpack.c.bf16 %v73_v15, %v72_v14  ;;  %v75_v21 = vld [vmem:[#allocation9 + $0x38] sm:$0xff]  ;;  %v167_v23 = vld [vmem:[#allocation11 + $0x30] sm:$0xff] }
  0x3e   :  { %499 = vmatprep.subr.bf16.mxu1 %v640_v0  ;;  %v503_v22 = vpack.c.bf16 %v166_v18, %v165_v17  ;;  %v168_v24 = vld [vmem:[#allocation11 + $0x38] sm:$0xff]  ;;  %v482_v25 = vpack.c.bf16 %v75_v21, %v74_v20  ;;  %v76_v26 = vld [vmem:[#allocation9 + $0x40] sm:$0xff]  ;;  %v77_v27 = vld [vmem:[#allocation9 + $0x48] sm:$0xff] }
  0x3f   :  { %v506_v28 = vpack.c.bf16 %v168_v24, %v167_v23  ;;  %v169_v29 = vld [vmem:[#allocation11 + $0x40] sm:$0xff]  ;;  %v170_v30 = vld [vmem:[#allocation11 + $0x48] sm:$0xff]  ;;  %v485_v31 = vpack.c.bf16 %v77_v27, %v76_v26  ;;  %v78_v32 = vld [vmem:[#allocation9 + $0x50] sm:$0xff] }
  0x40   :  { %477 = vmatpush3.bf16.msra.mxu0 %v476_v10  ;;  %v79_v33 = vld [vmem:[#allocation9 + $0x58] sm:$0xff]  ;;  %v509_v34 = vpack.c.bf16 %v170_v30, %v169_v29  ;;  %v171_v35 = vld [vmem:[#allocation11 + $0x50] sm:$0xff]  ;;  %v80_v38 = vld [vmem:[#allocation9 + $0x60] sm:$0xff]  ;;  %v287_v10 = vsub.s32 0, %v286_v6 }
  0x41   :  { %478 = vmatprep.subr.bf16.mxu0 %v640_v0  ;;  %501 = vmatpush3.bf16.msra.mxu1 %v500_v16  ;;  %v172_v36 = vld [vmem:[#allocation11 + $0x58] sm:$0xff]  ;;  %v488_v37 = vpack.c.bf16 %v79_v33, %v78_v32  ;;  %v81_v39 = vld [vmem:[#allocation9 + $0x68] sm:$0xff]  ;;  %v173_v41 = vld [vmem:[#allocation11 + $0x60] sm:$0xff] }
  0x42   :  { %502 = vmatprep.subr.bf16.mxu1 %v640_v0  ;;  %v512_v40 = vpack.c.bf16 %v172_v36, %v171_v35  ;;  %v174_v42 = vld [vmem:[#allocation11 + $0x68] sm:$0xff]  ;;  %v491_v43 = vpack.c.bf16 %v81_v39, %v80_v38  ;;  %v82_v44 = vld [vmem:[#allocation9 + $0x70] sm:$0xff]  ;;  %v83_v45 = vld [vmem:[#allocation9 + $0x78] sm:$0xff] }
  0x43   :  { %v515_v46 = vpack.c.bf16 %v174_v42, %v173_v41  ;;  %v175_v47 = vld [vmem:[#allocation11 + $0x70] sm:$0xff]  ;;  %v176_v48 = vld [vmem:[#allocation11 + $0x78] sm:$0xff]  ;;  %v494_v49 = vpack.c.bf16 %v83_v45, %v82_v44 }
  0x44   :  { %480 = vmatpush3.bf16.msra.mxu0 %v479_v19  ;;  %v518_v50 = vpack.c.bf16 %v176_v48, %v175_v47  ;;  %v67_v51 = vld [vmem:[#allocation6] sm:$0x1]  ;;  %v160_v52 = vld [vmem:[%s769_s5] sm:$0xff]  ;;  %v273_v9 = vld [vmem:[#allocation3] sm:$0x1] }
  0x45   :  { %481 = vmatprep.subr.bf16.mxu0 %v640_v0  ;;  %504 = vmatpush3.bf16.msra.mxu1 %v503_v22  ;;  %v84_v53 = vld [vmem:[%s766_s2] sm:$0x1]  ;;  %v307_v39 = vld [vmem:[#allocation5] sm:$0x1]  ;;  %s645_s2 = smov [#allocation12]  }
  0x46   :  { %505 = vmatprep.subr.bf16.mxu1 %v640_v0  ;;  %v367_v61 = vld [vmem:[%s768_s4] ss:$0 sm:$0xff]  ;;  %s356_s4 = sshll.u32 %s645_s2, 4  ;;  %s357_s4 = int_to_ptr.vmem [resolvable:$true] %s356_s4 }
  0x47   :  { %s607_s5 = scalar_lea.vmem %s357_s4, 16  ;;  %s611_s15 = scalar_lea.vmem %s357_s4, 32 }
  0x48   :  { %483 = vmatpush3.bf16.msra.mxu0 %v482_v25  ;;  %v294_v25 = vld [vmem:[#allocation4] sm:$0x1]  ;;  %p608_p10 = scmp.ne.s32.totalorder %s357_s4, %s607_s5  ;;  %p612_p11 = scmp.lt.s32.totalorder %s357_s4, %s357_s4 }
  0x49   :  { %484 = vmatprep.subr.bf16.mxu0 %v640_v0  ;;  %507 = vmatpush3.bf16.msra.mxu1 %v506_v28  ;;  %p613_p12 = scmp.lt.s32.totalorder %s611_s15, %s607_s5 }
  0x4a   :  { %508 = vmatprep.subr.bf16.mxu1 %v640_v0 }
  0x4b   :  { %p614_p13 = por %p613_p12, %p612_p11 }
  0x4c   :  { %486 = vmatpush3.bf16.msra.mxu0 %v485_v31 }
  0x4d   :  { %487 = vmatprep.subr.bf16.mxu0 %v640_v0  ;;  %510 = vmatpush3.bf16.msra.mxu1 %v509_v34  ;;  %p615_p0 = pnand %p614_p13, %p608_p10 }
  0x4e   :  { %511 = vmatprep.subr.bf16.mxu1 %v640_v0 }
  0x50   :  { %489 = vmatpush3.bf16.msra.mxu0 %v488_v37 }
  0x51   :  { %490 = vmatprep.subr.bf16.mxu0 %v640_v0  ;;  %513 = vmatpush3.bf16.msra.mxu1 %v512_v40 }
  0x52   :  { %514 = vmatprep.subr.bf16.mxu1 %v640_v0 }
  0x54   :  { %492 = vmatpush3.bf16.msra.mxu0 %v491_v43 }
  0x55   :  { %493 = vmatprep.subr.bf16.mxu0 %v640_v0  ;;  %516 = vmatpush3.bf16.msra.mxu1 %v515_v46 }
  0x56   :  { %517 = vmatprep.subr.bf16.mxu1 %v640_v0  ;;  %v644_v0 = vmov 0  }
  0x57   :  { %532 = vset.pattern.permute.xlu1 %v644_v0  ;;  %531 = vset.pattern.permute.xlu0 %v644_v0 }
  0x58   :  { %495 = vmatpush3.bf16.msra.mxu0 %v494_v49 }
  0x59   :  { %519 = vmatpush3.bf16.msra.mxu1 %v518_v50 }
  0x5b   :  { %435 = vmatmul.mubr.f32.vlgmr.msra.gmra.mrb[0].mxu0 %v67_v51 }
  0x5c   :  { %470 = vmatmul.mubr.f32.vlgmr.msra.gmra.mrb[0].mxu1 %v160_v52 }
 0x12e   :  { %v151_v54 = vpop.f32.mrb[0].mxu0 }
 0x12f   :  { %v152_v55 = vadd.f32 %v151_v54, %v84_v53  ;;  %v436_v56 = vpop.f32.mrb[1].mxu0  ;;  %v243_v57 = vpop.f32.mrb[0].mxu1 }
 0x130   :  { %v471_v58 = vpop.f32.mrb[1].mxu1 }
 0x131   :  { %155 = vst [vmem:[#allocation2] sm:$0x1] %v152_v55 }
 0x138   :  { %v366_v59 = vld [vmem:[#allocation2] ss:$0 sm:$0xff] }
 0x139   :  { %v254_v60 = vadd.f32 %v366_v59, %v243_v57 }
 0x13b   :  { %533 = vtanh.f32 %v254_v60 }
 0x145   :  { %v534_v62 = vpop.eup %533 }
 0x146   :  { %v263_v63 = vmul.f32 %v534_v62, %v367_v61 }
 0x148   :  { %264 = vadd.xlane.f32.xlu0 %v263_v63 }
 0x1d5   :  { %v265_v1 = vpop.xlane.xlu0 %264 }
 0x1d6   :  { %v274_v2 = vrot.slane %v265_v1, 4 }
 0x1d8   :  { %v275_v4 = vmax.f32 %v265_v1, %v274_v2 }
 0x1da   :  { %v276_v5 = vrot.slane %v275_v4, 2 }
 0x1dc   :  { %v277_v7 = vmax.f32 %v275_v4, %v276_v5 }
 0x1de   :  { %v278_v8 = vrot.slane %v277_v7, 1 }
 0x1e0   :  { %v279_v11 = vmax.f32 %v277_v7, %v278_v8 }
 0x1e2   :  { %v280_v12 = vmax.f32 %v273_v9, %v279_v11 }
 0x1e4   :  { %v288_v13 = vrot.slane %v280_v12, %v287_v10  ;;  %332 = vst.msk [vmem:[#allocation3] sm:$0x1] %vm156_vm0, %v280_v12  ;;  %v281_v14 = vsub.f32 %v273_v9, %v280_v12 }
 0x1e6   :  { %v290_v15 = vsub.f32 %v265_v1, %v288_v13  ;;  %v282_v16 = vmul.f32 1.442695, %v281_v14 }
 0x1e8   :  { %v291_v17 = vmul.f32 1.442695, %v290_v15  ;;  %535 = vpow2.f32 %v282_v16 }
 0x1ea   :  { %537 = vpow2.f32 %v291_v17 }
 0x1f2   :  { %v536_v18 = vpop.eup %535 }
 0x1f3   :  { %310 = vperm.xlu1 %532, %v536_v18   ;;  %v295_v28 = vmul.f32 %v536_v18, %v294_v25 }
 0x1f4   :  { %v538_v19 = vpop.eup %537 }
 0x1f5   :  { %v297_v20 = vsel %vm296_vm2, %v538_v19, 0.0  ;;  %320 = vperm.xlu0 %531, %v538_v19  }
 0x1f6   :  { %v298_v21 = vrot.slane %v297_v20, 4 }
 0x1f8   :  { %v299_v22 = vadd.f32 %v298_v21, %v297_v20 }
 0x1fa   :  { %v300_v23 = vrot.slane %v299_v22, 2 }
 0x1fc   :  { %v301_v24 = vadd.f32 %v300_v23, %v299_v22 }
 0x1fe   :  { %v302_v26 = vrot.slane %v301_v24, 1 }
 0x200   :  { %v303_v27 = vadd.f32 %v302_v26, %v301_v24 }
 0x202   :  { %v304_v29 = vadd.f32 %v303_v27, %v295_v28 }
 0x204   :  { %306 = vst.msk [vmem:[#allocation4] sm:$0x1] %vm156_vm0, %v304_v29 }
 0x20b   :  { %v337_v30 = vld [vmem:[#allocation4] sm:$0x1] }
 0x20c   :  { %340 = vperm.xlu1 %532, %v337_v30  }
 0x272   :  { %v311_v35 = vpop.permute.xlu1 %310 }
 0x273   :  { %v316_v37 = vrot.slane %v311_v35, %v287_v10 }
 0x274   :  { %v321_v31 = vpop.permute.xlu0 %320 }
 0x275   :  { %v323_v32 = vmul.f32 %v321_v31, %v160_v52  ;;  %v317_v41 = vmul.f32 %v316_v37, %v307_v39 }
 0x277   :  { %v324_v33 = vrot.slane %v323_v32, 4 }
 0x279   :  { %v325_v34 = vadd.f32 %v324_v33, %v323_v32 }
 0x27b   :  { %v326_v36 = vrot.slane %v325_v34, 2 }
 0x27d   :  { %v327_v38 = vadd.f32 %v326_v36, %v325_v34 }
 0x27f   :  { %v328_v40 = vrot.slane %v327_v38, 1 }
 0x281   :  { %v329_v42 = vadd.f32 %v328_v40, %v327_v38 }
 0x283   :  { %v330_v43 = vadd.f32 %v329_v42, %v317_v41 }
 0x285   :  { %331 = vst [vmem:[#allocation5] sm:$0x1] %v330_v43 }
 0x28b   :  { %v341_v44 = vpop.permute.xlu1 %340 }
 0x28c   :  { %v346_v45 = vrot.slane %v341_v44, %v287_v10  ;;  %v336_v47 = vld [vmem:[#allocation5] sm:$0x1] }
 0x28e   :  { %539 = vrcp.f32 %v346_v45 }
 0x298   :  { %v540_v46 = vpop.eup %539 }
 0x299   :  { %v348_v48 = vmul.f32 %v540_v46, %v336_v47 }
 0x29b   :  { %349 = vst [vmem:[#allocation12] sm:$0x1] %v348_v48 }
 0x29c   :  { %618 = shalt.err (!%p615_p0)
}
 0x29d   :  { %s619_s18 = scalar_lea.hbm %s770_s6, 16 }
 0x29e   :  { %p620_p1 = scmp.ne.s32.totalorder %s770_s6, %s619_s18  ;;  %p623_p2 = scmp.lt.u32.totalorder %s619_s18, %s770_s6 }
 0x2a0   :  { %p625_p3 = pnand %p623_p2, %p620_p1 }
 0x2a2   :  { %628 = shalt.err (!%p625_p3)
}
 0x2a3   :  { %359 = dma.vmem_to_hbm [thread:$0]  %s357_s4, 16, %s770_s6, [#allocation8]  }
 0x2a4   :  { %633 = dma.done.wait [#allocation8], 16  }
 0x2a5   :  { %634 = vsyncadd [#allocation8], 4294967280 }
 0x2a6   :  { %363 = vsyncpa [#allocation7], 1 }
 0x2a7   :  { %364 = vsyncpa [#allocation10], 1 }
 0x2a8   :  { %365 = vsyncpa [#allocation8], 1 }

</bundles_post_ra>
